<compile_context>
chip_gen: v5e
topology: v5e:2x2
jax: 0.10.0
libtpu: 0.0.40
codegen_flags: <defaults>
</compile_context>

<pallas_src>
import jax
import jax.numpy as jnp
from jax.experimental import pallas as pl
from jax.experimental.pallas import tpu as pltpu

EPS = 1e-5
_VMEM_LIMIT = 32 * 1024 * 1024   # scoped-VMEM request; safe on v5e/v6e/v7x


# ----------------------------------------------------------------------------
# Kernels
# ----------------------------------------------------------------------------
def bn1_stats_kernel(x_ref, xold_ref, sum_ref, sq_ref):
    """Per-tile partial sum / sum-of-squares of (x + x_old), per feature."""
    s = x_ref[...] + xold_ref[...]                                   # [tm, D] f32
    sum_ref[...] = jnp.sum(s, axis=0, keepdims=True).reshape(sum_ref.shape)
    sq_ref[...] = jnp.sum(s * s, axis=0, keepdims=True).reshape(sq_ref.shape)


def ffn_kernel(x_ref, xold_ref, sc1_ref, sh1_ref, w1_ref, b1_ref, w2_ref, b2_ref,
               y_ref, sum_ref, sq_ref):
    # BN1 apply: scale/shift are pre-folded from the global stats in the wrapper,
    # so this is one fused multiply-add per element (broadcast of a resident [1,D]).
    h = (x_ref[...] + xold_ref[...]) * sc1_ref[...] + sh1_ref[...]   # [tm, D] f32

    # FFN: Linear -> ReLU -> Linear.  bf16 MXU operands, f32 accumulation.
    z = jnp.dot(h.astype(jnp.bfloat16), w1_ref[...],
                preferred_element_type=jnp.float32) + b1_ref[...]    # [tm, H]
    z = jnp.maximum(z, 0.0)
    f = jnp.dot(z.astype(jnp.bfloat16), w2_ref[...],
                preferred_element_type=jnp.float32) + b2_ref[...]    # [tm, D]

    y = h + f                                                        # residual, f32
    y_ref[...] = y

    # Partial BN2 statistics for this tile (single fused pass: sum & sum-of-squares).
    sum_ref[...] = jnp.sum(y, axis=0, keepdims=True).reshape(sum_ref.shape)
    sq_ref[...] = jnp.sum(y * y, axis=0, keepdims=True).reshape(sq_ref.shape)


def bn2_apply_kernel(y_ref, sc2_ref, sh2_ref, o_ref):
    o_ref[...] = y_ref[...] * sc2_ref[...] + sh2_ref[...]


# ----------------------------------------------------------------------------
# Wrapper
# ----------------------------------------------------------------------------
def _pick_tile_rows(m, target):
    """Largest multiple of 8 that divides m and is <= target (or m itself)."""
    if m % 8 != 0:
        return m                      # full-extent block is always legal
    tm = min(target, m)
    tm -= tm % 8
    while m % tm != 0:
        tm -= 8
    return tm


def _finalize_stats(part_sum, part_sq, m, gamma, beta):
    """Per-tile partial sums -> BN scale/shift (training mode, biased variance)."""
    d = gamma.shape[-1]
    mean = jnp.sum(part_sum, axis=(0, 1)) / m
    var = jnp.sum(part_sq, axis=(0, 1)) / m - mean * mean
    rstd = jax.lax.rsqrt(var + EPS)
    scale = gamma.reshape(d) * rstd
    shift = beta.reshape(d) - mean * scale
    return scale.reshape(1, d), shift.reshape(1, d)


def transformer_ffn(x, x_old, params, *, tile_rows=256):
    """x, x_old: [B, N, D] float32.  Returns [B, N, D] float32."""
    B, N, D = x.shape
    M = B * N
    w1, b1, w2, b2, g1, be1, g2, be2 = params
    H = w1.shape[1]

    x2 = x.reshape(M, D)
    xo2 = x_old.reshape(M, D)

    # Tile the row axis.  With tile_rows=256 the per-step MXU operands are
    # [256, D] x [D, H]; VMEM per step stays bounded independent of M
    # (re-derive tile_rows downward for very large D*H on v7x's 64 MiB VMEM).
    # NOTE: at realistic sizes choose D, H as multiples of 128 for lane-dense
    # activations / unmasked stores; here blocks use the full (small) minor dim.
    tm = _pick_tile_rows(M, tile_rows)
    nt = M // tm

    row_spec = pl.BlockSpec((tm, D), lambda i: (i, 0))
    vecD_spec = pl.BlockSpec((1, D), lambda i: (0, 0))         # resident per-feature vecs
    vecH_spec = pl.BlockSpec((1, H), lambda i: (0, 0))
    w1_spec = pl.BlockSpec((D, H), lambda i: (0, 0))           # resident weights
    w2_spec = pl.BlockSpec((H, D), lambda i: (0, 0))
    stat_spec = pl.BlockSpec((1, 1, D), lambda i: (i, 0, 0))   # per-tile partial stats
    stat_shape = jax.ShapeDtypeStruct((nt, 1, D), jnp.float32)

    cparams = pltpu.CompilerParams(
        dimension_semantics=("parallel",),      # row tiles are fully independent
        vmem_limit_bytes=_VMEM_LIMIT)

    # ---- pass 1: BN1 statistics over all M rows ------------------------------
    s1_sum, s1_sq = pl.pallas_call(
        bn1_stats_kernel,
        out_shape=(stat_shape, stat_shape),
        grid_spec=pltpu.PrefetchScalarGridSpec(
            num_scalar_prefetch=0, grid=(nt,),
            in_specs=[row_spec, row_spec],
            out_specs=(stat_spec, stat_spec)),
        compiler_params=cparams,
    )(x2, xo2)
    scale1, shift1 = _finalize_stats(s1_sum, s1_sq, M, g1, be1)

    # ---- pass 2: apply BN1 + FFN + BN2 partial stats --------------------------
    w1b = w1.astype(jnp.bfloat16)
    w2b = w2.astype(jnp.bfloat16)
    y, s2_sum, s2_sq = pl.pallas_call(
        ffn_kernel,
        out_shape=(jax.ShapeDtypeStruct((M, D), jnp.float32), stat_shape, stat_shape),
        grid_spec=pltpu.PrefetchScalarGridSpec(
            num_scalar_prefetch=0, grid=(nt,),
            in_specs=[row_spec, row_spec, vecD_spec, vecD_spec,
                      w1_spec, vecH_spec, w2_spec, vecD_spec],
            out_specs=(row_spec, stat_spec, stat_spec)),
        compiler_params=cparams,
    )(x2, xo2, scale1, shift1, w1b, b1, w2b, b2)
    scale2, shift2 = _finalize_stats(s2_sum, s2_sq, M, g2, be2)

    # ---- pass 3: apply BN2 -----------------------------------------------------
    out = pl.pallas_call(
        bn2_apply_kernel,
        out_shape=jax.ShapeDtypeStruct((M, D), jnp.float32),
        grid_spec=pltpu.PrefetchScalarGridSpec(
            num_scalar_prefetch=0, grid=(nt,),
            in_specs=[row_spec, vecD_spec, vecD_spec],
            out_specs=row_spec),
        compiler_params=cparams,
    )(y, scale2, shift2)

    return out.reshape(B, N, D)


# ----------------------------------------------------------------------------
# Parameters + reference
# ----------------------------------------------------------------------------
def make_params(key, embed_dim, hidden):
    k1, k2, k3, k4 = jax.random.split(key, 4)
    # nn.Linear init: U(-1/sqrt(fan_in), 1/sqrt(fan_in)); weights stored as [in, out]
    lim1 = 1.0 / (embed_dim ** 0.5)
    lim2 = 1.0 / (hidden ** 0.5)
    w1 = jax.random.uniform(k1, (embed_dim, hidden), jnp.float32, -lim1, lim1)
    b1 = jax.random.uniform(k2, (1, hidden), jnp.float32, -lim1, lim1)
    w2 = jax.random.uniform(k3, (hidden, embed_dim), jnp.float32, -lim2, lim2)
    b2 = jax.random.uniform(k4, (1, embed_dim), jnp.float32, -lim2, lim2)
    # BatchNorm1d affine init: weight=1, bias=0
    g1 = jnp.ones((1, embed_dim), jnp.float32)
    be1 = jnp.zeros((1, embed_dim), jnp.float32)
    g2 = jnp.ones((1, embed_dim), jnp.float32)
    be2 = jnp.zeros((1, embed_dim), jnp.float32)
    return (w1, b1, w2, b2, g1, be1, g2, be2)


def _bn_ref(h, gamma, beta):
    mean = jnp.mean(h, axis=0, keepdims=True)
    var = jnp.mean((h - mean) ** 2, axis=0, keepdims=True)
    return (h - mean) * jax.lax.rsqrt(var + EPS) * gamma + beta


def reference(x, x_old, params, matmul_dtype=jnp.float32):
    w1, b1, w2, b2, g1, be1, g2, be2 = params
    B, N, D = x.shape
    h = _bn_ref((x_old + x).reshape(-1, D), g1, be1)
    z = jnp.maximum(
        jnp.dot(h.astype(matmul_dtype), w1.astype(matmul_dtype),
                preferred_element_type=jnp.float32) + b1, 0.0)
    f = jnp.dot(z.astype(matmul_dtype), w2.astype(matmul_dtype),
                preferred_element_type=jnp.float32) + b2
    y = _bn_ref(h + f, g2, be2)
    return y.reshape(B, N, D)


if __name__ == "__main__":
    B, N, D, H = 2, 8, 32, 64  # batch, seq, embed_dim, feed_forward_hidden
    key = jax.random.PRNGKey(0)
    kx, kxo, kp = jax.random.split(key, 3)

    x = jax.random.normal(kx, (B, N, D), jnp.float32)
    x_old = jax.random.normal(kxo, (B, N, D), jnp.float32)
    params = make_params(kp, D, H)

    # tile_rows=8 so the tiny demo still exercises the multi-tile (grid > 1) path.
    out = transformer_ffn(x, x_old, params, tile_rows=8)
    out = jax.block_until_ready(out)

    # Tight check vs a reference that uses the same bf16 MXU operands.
    ref_bf16 = reference(x, x_old, params, matmul_dtype=jnp.bfloat16)
    assert jnp.allclose(out, ref_bf16, atol=2e-3, rtol=2e-3), "mismatch vs bf16-matmul reference"

    # Looser check vs the pure-f32 (PyTorch-equivalent) reference.
    ref_f32 = reference(x, x_old, params, matmul_dtype=jnp.float32)
    assert jnp.allclose(out, ref_f32, atol=5e-2, rtol=5e-2), "mismatch vs f32 reference"

    print("KERNEL_OK")
</pallas_src>

<mosaic_0001>
module attributes {stable_mosaic.version = 11 : i64} {
  func.func @bn1_stats_kernel(%arg0: i32, %arg1: memref<8x32xf32, #tpu.memory_space<vmem>>, %arg2: memref<8x32xf32, #tpu.memory_space<vmem>>, %arg3: memref<1x1x32xf32, #tpu.memory_space<vmem>>, %arg4: memref<1x1x32xf32, #tpu.memory_space<vmem>>) attributes {dimension_semantics = [#tpu.dimension_semantics<parallel>], iteration_bounds = array<i64: 2>, scalar_prefetch = 0 : i64, scratch_operands = 0 : i64, tpu.core_type = #tpu.core_type<tc>, window_params = [{transform_indices = @transform_0, window_bounds = array<i64: 8, 32>}, {transform_indices = @transform_1, window_bounds = array<i64: 8, 32>}, {transform_indices = @transform_2, window_bounds = array<i64: 1, 1, 32>}, {transform_indices = @transform_3, window_bounds = array<i64: 1, 1, 32>}]} {
    %c0 = arith.constant 0 : index
    %c0_0 = arith.constant 0 : index
    %0 = vector.load %arg1[%c0, %c0_0] : memref<8x32xf32, #tpu.memory_space<vmem>>, vector<8x32xf32>
    %c0_1 = arith.constant 0 : index
    %c0_2 = arith.constant 0 : index
    %1 = vector.load %arg2[%c0_1, %c0_2] : memref<8x32xf32, #tpu.memory_space<vmem>>, vector<8x32xf32>
    %2 = arith.addf %0, %1 : vector<8x32xf32>
    %cst = arith.constant dense<0.000000e+00> : vector<32xf32>
    %3 = vector.multi_reduction <add>, %2, %cst [0] : vector<8x32xf32> to vector<32xf32>
    %4 = vector.shape_cast %3 : vector<32xf32> to vector<1x32xf32>
    %5 = vector.shape_cast %4 : vector<1x32xf32> to vector<1x1x32xf32>
    %c0_3 = arith.constant 0 : index
    %c0_4 = arith.constant 0 : index
    %c0_5 = arith.constant 0 : index
    %6 = vector.load %arg3[%c0_3, %c0_4, %c0_5] : memref<1x1x32xf32, #tpu.memory_space<vmem>>, vector<1x1x32xf32>
    tpu.vector_store %arg3[%c0_3, %c0_4, %c0_5], %5 {strides = array<i32>} : memref<1x1x32xf32, #tpu.memory_space<vmem>>, vector<1x1x32xf32>,
    %7 = arith.mulf %2, %2 : vector<8x32xf32>
    %cst_6 = arith.constant dense<0.000000e+00> : vector<32xf32>
    %8 = vector.multi_reduction <add>, %7, %cst_6 [0] : vector<8x32xf32> to vector<32xf32>
    %9 = vector.shape_cast %8 : vector<32xf32> to vector<1x32xf32>
    %10 = vector.shape_cast %9 : vector<1x32xf32> to vector<1x1x32xf32>
    %c0_7 = arith.constant 0 : index
    %c0_8 = arith.constant 0 : index
    %c0_9 = arith.constant 0 : index
    %11 = vector.load %arg4[%c0_7, %c0_8, %c0_9] : memref<1x1x32xf32, #tpu.memory_space<vmem>>, vector<1x1x32xf32>
    tpu.vector_store %arg4[%c0_7, %c0_8, %c0_9], %10 {strides = array<i32>} : memref<1x1x32xf32, #tpu.memory_space<vmem>>, vector<1x1x32xf32>,
    return
  }
  func.func @transform_0(%arg0: i32) -> (i32, i32) {
    %c0_i32 = arith.constant 0 : i32
    %c0_i32_0 = arith.constant 0 : i32
    return %arg0, %c0_i32 : i32, i32
  }
  func.func @transform_1(%arg0: i32) -> (i32, i32) {
    %c0_i32 = arith.constant 0 : i32
    %c0_i32_0 = arith.constant 0 : i32
    return %arg0, %c0_i32 : i32, i32
  }
  func.func @transform_2(%arg0: i32) -> (i32, i32, i32) {
    %c0_i32 = arith.constant 0 : i32
    %c0_i32_0 = arith.constant 0 : i32
    %c0_i32_1 = arith.constant 0 : i32
    return %arg0, %c0_i32, %c0_i32_0 : i32, i32, i32
  }
  func.func @transform_3(%arg0: i32) -> (i32, i32, i32) {
    %c0_i32 = arith.constant 0 : i32
    %c0_i32_0 = arith.constant 0 : i32
    %c0_i32_1 = arith.constant 0 : i32
    return %arg0, %c0_i32, %c0_i32_0 : i32, i32, i32
  }
}

</mosaic_0001>

<bundles_post_ra>
// kernel: tpu_custom_call.1
= control target key start
LH: loop header
LB: loop body
LE: loop exit
PB: predicated region body
PF: predicated region fallthrough
CT: control target
= control target key end

     0   :  { %9 = vsyncpa [#allocation3], 0  ;;  %s854_s0 = inlined_call_operand.hbm [shape: f32[16,32], index: 0, kind: input, shape index: {}]   ;;  %s855_s1 = inlined_call_operand.hbm [shape: f32[16,32], index: 1, kind: input, shape index: {}]   ;;  %s856_s2 = inlined_call_operand.hbm [shape: f32[2,1,32], index: 2, kind: output, shape index: {0}]   ;;  %s857_s3 = inlined_call_operand.hbm [shape: f32[2,1,32], index: 3, kind: output, shape index: {1}]  }
   0x1   :  { %11 = vsyncpa [#allocation3 + $0x1], 0 }
   0x2   :  { %12 = vsyncpa [#allocation6], 0 }
   0x3   :  { %14 = vsyncpa [#allocation6 + $0x1], 0 }
   0x4   :  { %15 = vsyncpa [#allocation4], 0 }
   0x5   :  { %17 = vsyncpa [#allocation4 + $0x1], 0 }
   0x6   :  { %18 = vsyncpa [#allocation9], 0 }
   0x7   :  { %20 = vsyncpa [#allocation9 + $0x1], 0  ;;  %s657_s12 = smov 0   ;;  %s659_s13 = smov 0  }
   0x8   :  { %s661_s14 = smov 0   ;;  %s663_s15 = smov 0  }
   0x9 LB: > { %s678_s16 = sadd.s32 4294967295, %s635_s15   ;;  %s405_s17 = sadd.s32 4294967294, %s635_s15   ;;  %s635_s15 = sphi %s663_s15, %s868_s15   ;;  %s631_s14 = sphi %s661_s14, %s867_s14   ;;  %s627_s13 = sphi %s659_s13, %s866_s13   ;;  %s623_s12 = sphi %s657_s12, %s865_s12  }
   0xa   : > { %s682_s18 = sadd.s32 1, %s635_s15   ;;  %s33_s19 = sadd.s32 1, %s631_s14 }
   0xb   : > { %s30_s20 = ssub.s32 %s635_s15, %s682_s18  ;;  %p40_p0 = scmp.ne.s32.totalorder %s631_s14, %s627_s13 }
   0xc   : > { %p31_p1 = scmp.eq.s32.totalorder %s30_s20, 0  ;;  %p41_p2 = scmp.eq.s32.totalorder %s635_s15, 0 }
   0xd   : > { %p46_p3 = scmp.ne.s32.totalorder %s627_s13, %s623_s12  ;;  %p47_p4 = scmp.eq.s32.totalorder %s678_s16, 0 }
   0xe   : > { %s694_s21 = scalar_select %p31_p1, %s631_s14, %s33_s19  }
   0xf   : > { %p696_p5 = por %p41_p2, %p40_p0  ;;  %p700_p6 = por %p47_p4, %p46_p3 }
  0x10   : > { %p96_p7 = scmp.eq.s32.totalorder %s678_s16, 1  ;;  %p102_p8 = scmp.eq.s32.totalorder %s405_s17, 1 }
  0x11   : > { %p439_p10 = scmp.lt.s32.totalorder %s635_s15, 2  ;;  %s716_s26 = sand.u32 1, %s631_s14  }
  0x12   : > { %p707_p11 = por %p96_p7, %p40_p0  ;;  %p711_p12 = por %p102_p8, %p46_p3 }
  0x13   : > { %s409_s27 = sshll.u32 %s635_s15, 3  ;;  %s408_s28 = sshll.u32 %s716_s26, 3 }
  0x14   : > { %s156_s4 = scalar_lea.hbm %s854_s0, %s409_s27  ;;  %s152_s6 = scalar_lea.vmem [#allocation2], %s408_s28 }
  0x15   : > { %s158_s5 = sshll.u32 %s156_s4, 4  ;;  %s160_s7 = sshll.u32 %s152_s6, 4  ;;  %s159_s5 = int_to_ptr.hbm [resolvable:$true] %s158_s5  ;;  %s161_s7 = int_to_ptr.vmem [resolvable:$true] %s160_s7 }
  0x16   : > { %p725_p13 = pnand %p439_p10, %p696_p5  ;;  %p412_p0 = scmp.ge.s32.totalorder %s635_s15, 1 }
  0x17   : > { %p184_p1 = scmp.lt.s32.totalorder %s635_s15, 3  ;;  %s149_s9 = scalar_lea.sflag [#allocation3], %s716_s26 }
  0x18   : > { %s473_s10 = sshra.s32 %s159_s5, 4  ;;  %p477_p3 = pneg %p725_p13  ;;  %s474_s10 = int_to_ptr.hbm [resolvable:$true] %s473_s10 }
  0x19   : > { %s475_s11 = scalar_lea.hbm %s474_s10, 8  ;;  %s480_s20 = scalar_lea.hbm %s854_s0, 16 }
  0x1a   : > { %p476_p2 = scmp.ne.s32.totalorder %s474_s10, %s475_s11  ;;  %p481_p5 = scmp.lt.s32.totalorder %s474_s10, %s854_s0 }
  0x1b   : > { %p482_p8 = scmp.lt.s32.totalorder %s480_s20, %s475_s11 }
  0x1c   : > { %p478_p4 = pnand %p477_p3, %p476_p2 }
  0x1d   : > { %p483_p10 = por %p482_p8, %p481_p5 }
  0x1e   : > { %p479_p7 = pneg %p478_p4 }
  0x20   : > { %p484_p9 = pnand %p483_p10, %p479_p7 }
  0x22   : > { %487 = shalt.err (!%p484_p9)
}
  0x23   : > { %428 = dma.hbm_to_vmem [thread:$0]  (!%p725_p13), %s159_s5, 128, %s161_s7, %s149_s9  }
  0x24   : > { %p749_p2 = pnand %p412_p0, %p184_p1  ;;  %s175_s10 = scalar_lea.hbm %s855_s1, %s409_s27 }
  0x25   : > { %s177_s11 = sshll.u32 %s175_s10, 4  ;;  %s171_s17 = scalar_lea.vmem [#allocation5], %s408_s28  ;;  %s178_s11 = int_to_ptr.hbm [resolvable:$true] %s177_s11 }
  0x26   : > { %s179_s19 = sshll.u32 %s171_s17, 4  ;;  %s168_s20 = scalar_lea.sflag [#allocation6], %s716_s26  ;;  %s180_s19 = int_to_ptr.vmem [resolvable:$true] %s179_s19 }
  0x27   : > { %s503_s22 = sshra.s32 %s178_s11, 4  ;;  %s510_s9 = scalar_lea.hbm %s855_s1, 16  ;;  %s504_s22 = int_to_ptr.hbm [resolvable:$true] %s503_s22 }
  0x28   : > { %s505_s29 = scalar_lea.hbm %s504_s22, 8  ;;  %p511_p4 = scmp.lt.s32.totalorder %s504_s22, %s855_s1 }
  0x29   : > { %p506_p9 = scmp.ne.s32.totalorder %s504_s22, %s505_s29  ;;  %p512_p7 = scmp.lt.s32.totalorder %s510_s9, %s505_s29 }
  0x2b   : > { %p508_p0 = pnand %p506_p9, %p477_p3  ;;  %p513_p5 = por %p512_p7, %p511_p4 }
  0x2d   : > { %p509_p1 = pneg %p508_p0 }
  0x2f   : > { %p514_p8 = pnand %p513_p5, %p509_p1 }
  0x31   : > { %517 = shalt.err (!%p514_p8)
}
  0x32   : > { %431 = dma.hbm_to_vmem [thread:$0]  (!%p725_p13), %s178_s11, 128, %s180_s19, %s168_s20  }
  0x33   : > { %188 = sbr.rel (%p749_p2) target bundleno = 90 (0x5a), region = 28  ;;  %s771_s26 = sand.u32 (!%p749_p2), 1, %s627_s13  }
  0x34   : > { %s413_s28 = sshll.u32 (!%p749_p2), %s771_s26, 3  ;;  %s191_s6 = scalar_lea.sflag (!%p749_p2), [#allocation3], %s771_s26 }
  0x35   : > { %s194_s10 = scalar_lea.vmem (!%p749_p2), [#allocation2], %s413_s28 }
  0x38   : > { %606 = dma.done.wait (%p700_p6), %s191_s6, 128  }
  0x39   : > { %608 = vsyncadd (%p700_p6), %s191_s6, 4294967168  ;;  %s201_s8 = scalar_lea.sflag [#allocation6], %s771_s26  ;;  %s204_s11 = scalar_lea.vmem [#allocation5], %s413_s28 }
  0x3a   : > { %610 = dma.done.wait (%p700_p6), %s201_s8, 128  }
  0x3b   : > { %612 = vsyncadd (%p700_p6), %s201_s8, 4294967168  ;;  %v236_v0 = vld [vmem:[%s194_s10] sm:$0xff]  ;;  %v237_v1 = vld [vmem:[%s204_s11] sm:$0xff]  ;;  %vm239_vm0 = vcmask 261120   ;;  %s271_s23 = scalar_lea.hbm %s856_s2, %s678_s16  ;;  %s229_s19 = scalar_lea.vmem [#allocation7], %s771_s26  ;;  %vm247_vm1 = vcmask 253952  }
  0x3c   : > { %v238_v2 = vadd.f32 %v237_v1, %v236_v0  ;;  %s789_s20 = sshll.u32 %s229_s19, 4  ;;  %s284_s5 = scalar_lea.hbm %s857_s3, %s678_s16  ;;  %s274_s20 = int_to_ptr.vmem [resolvable:$true] %s789_s20 }
  0x3d   : > { %s795_s7 = sshll.u32 %s271_s23, 4  ;;  %s235_s9 = scalar_lea.vmem [#allocation8], %s771_s26  ;;  %s276_s7 = int_to_ptr.hbm [resolvable:$true] %s795_s7 }
  0x3e   : > { %v240_v3 = vsel %vm239_vm0, %v238_v2, 0.0  ;;  %v249_v4 = vmul.f32 %v238_v2, %v238_v2  ;;  %s798_s4 = sshll.u32 %s235_s9, 4  ;;  %s801_s27 = sshll.u32 %s284_s5, 4  ;;  %s287_s4 = int_to_ptr.vmem [resolvable:$true] %s798_s4  ;;  %s289_s27 = int_to_ptr.hbm [resolvable:$true] %s801_s27 }
  0x3f   : > { %v241_v5 = vrot.slane %v240_v3, 4  ;;  %s259_s16 = scalar_lea.sflag [#allocation4], %s771_s26  ;;  %s547_s28 = sshra.s32 %s276_s7, 4  ;;  %s548_s28 = int_to_ptr.hbm [resolvable:$true] %s547_s28 }
  0x40   : > { %v250_v6 = vsel %vm239_vm0, %v249_v4, 0.0  ;;  %s549_s6 = scalar_lea.hbm %s548_s28, 1  ;;  %s553_s11 = scalar_lea.hbm %s856_s2, 2 }
  0x41   : > { %v242_v7 = vadd.f32 %v241_v5, %v240_v3  ;;  %v251_v8 = vrot.slane %v250_v6, 4  ;;  %p550_p6 = scmp.ne.s32.totalorder %s548_s28, %s549_s6  ;;  %p554_p10 = scmp.lt.s32.totalorder %s548_s28, %s856_s2 }
  0x42   : > { %p555_p2 = scmp.lt.s32.totalorder %s553_s11, %s549_s6 }
  0x43   : > { %v243_v9 = vrot.slane %v242_v7, 2  ;;  %v252_v10 = vadd.f32 %v251_v8, %v250_v6  ;;  %p551_p13 = pnand %p550_p6, %p707_p11 }
  0x44   : > { %p556_p9 = por %p555_p2, %p554_p10 }
  0x45   : > { %v244_v11 = vadd.f32 %v243_v9, %v242_v7  ;;  %v253_v12 = vrot.slane %v252_v10, 2  ;;  %p552_p3 = pneg %p551_p13 }
  0x47   : > { %v245_v13 = vrot.slane %v244_v11, 1  ;;  %v254_v14 = vadd.f32 %v253_v12, %v252_v10  ;;  %p557_p0 = pnand %p556_p9, %p552_p3 }
  0x49   : > { %v246_v15 = vadd.f32 %v245_v13, %v244_v11  ;;  %v255_v16 = vrot.slane %v254_v14, 1 }
  0x4b   : > { %248 = vst.msk [vmem:[%s229_s19] sm:$0x1] %vm247_vm1, %v246_v15  ;;  %v256_v17 = vadd.f32 %v255_v16, %v254_v14 }
  0x4c   : > { %560 = shalt.err (!%p557_p0)
}
  0x4d   : > { %421 = dma.vmem_to_hbm [thread:$0]  (%p707_p11), %s274_s20, 16, %s276_s7, %s259_s16   ;;  %257 = vst.msk [vmem:[%s235_s9] sm:$0x1] %vm247_vm1, %v256_v17 }
  0x4e   : > { %s263_s23 = scalar_lea.sflag [#allocation9], %s771_s26  ;;  %s575_s19 = sshra.s32 %s289_s27, 4  ;;  %s576_s19 = int_to_ptr.hbm [resolvable:$true] %s575_s19 }
  0x4f   : > { %s577_s22 = scalar_lea.hbm %s576_s19, 1  ;;  %s581_s28 = scalar_lea.hbm %s857_s3, 2 }
  0x50   : > { %p578_p1 = scmp.ne.s32.totalorder %s576_s19, %s577_s22  ;;  %p582_p5 = scmp.lt.s32.totalorder %s576_s19, %s857_s3 }
  0x51   : > { %p583_p8 = scmp.lt.s32.totalorder %s581_s28, %s577_s22 }
  0x52   : > { %p579_p4 = pnand %p578_p1, %p707_p11 }
  0x53   : > { %p584_p6 = por %p583_p8, %p582_p5 }
  0x54   : > { %p580_p7 = pneg %p579_p4 }
  0x56   : > { %p585_p13 = pnand %p584_p6, %p580_p7 }
  0x58   : > { %588 = shalt.err (!%p585_p13)
}
  0x59   : > { %422 = dma.vmem_to_hbm [thread:$0]  (%p707_p11), %s287_s4, 16, %s289_s27, %s263_s23  }
  0x5a PF: > { %s300_s26 = sand.u32 1, %s623_s12   ;;  %p864_p3 = scmp.ge.s32.totalorder %s635_s15, 2 }
  0x5b   : > { %s301_s20 = scalar_lea.sflag [#allocation4], %s300_s26 }
  0x5c   : > { %p433_p10 = pnand %p864_p3, %p711_p12 }
  0x5e   : > { %p434_p2 = pneg %p433_p10 }
  0x60   : > { %614 = dma.done.wait (%p434_p2), %s301_s20, 16  }
  0x61   : > { %616 = vsyncadd (%p434_p2), %s301_s20, 4294967280  ;;  %s310_s7 = scalar_lea.sflag [#allocation9], %s300_s26 }
  0x62   : > { %618 = dma.done.wait (%p434_p2), %s310_s7, 16  }
  0x63   : > { %620 = vsyncadd (%p434_p2), %s310_s7, 4294967280  ;;  %p23_p11 = scmp.ge.s32.totalorder %s682_s18, 4   ;;  %s865_s12 = smov %s627_s13 }
  0x64   : > { %s866_s13 = smov %s631_s14  ;;  %s867_s14 = smov %s694_s21 }
  0x65   : > { %s868_s15 = smov %s682_s18  ;;  %25 = sbr.rel (!%p23_p11) target bundleno = 9 (0x9), region = 103 }
  0x6a   :  { %315 = vsyncpa [#allocation3], 1 }
  0x6b   :  { %317 = vsyncpa [#allocation3 + $0x1], 1 }
  0x6c   :  { %318 = vsyncpa [#allocation6], 1 }
  0x6d   :  { %320 = vsyncpa [#allocation6 + $0x1], 1 }
  0x6e   :  { %321 = vsyncpa [#allocation4], 1 }
  0x6f   :  { %323 = vsyncpa [#allocation4 + $0x1], 1 }
  0x70   :  { %324 = vsyncpa [#allocation9], 1 }
  0x71   :  { %326 = vsyncpa [#allocation9 + $0x1], 1 }

</bundles_post_ra>
